<compile_context>
chip_gen: v7x
topology: tpu7x:2x2x1
jax: 0.10.0
libtpu: 0.0.40
codegen_flags: <defaults>
</compile_context>

<pallas_src>
import jax
import jax.numpy as jnp
from jax.experimental import pallas as pl
from jax.experimental.pallas import tpu as pltpu


def _round_up(n, m):
    return ((n + m - 1) // m) * m


def value_network_kernel(x_ref, w1_ref, b1_ref, w2_ref, b2_ref, w3_ref, b3_ref,
                         o_ref):
    # x tile: (TB, S) f32 -> bf16 for the MXU; accumulation stays f32.
    x = x_ref[...].astype(jnp.bfloat16)

    # layer 1: Linear(state_dim -> hidden) + ReLU
    h1 = jnp.dot(x, w1_ref[...], preferred_element_type=jnp.float32)
    h1 = jnp.maximum(h1 + b1_ref[...], 0.0)                       # (TB, H) f32

    # layer 2: Linear(hidden -> hidden) + ReLU
    h2 = jnp.dot(h1.astype(jnp.bfloat16), w2_ref[...],
                 preferred_element_type=jnp.float32)
    h2 = jnp.maximum(h2 + b2_ref[...], 0.0)                       # (TB, H) f32

    # layer 3: Linear(hidden -> 1).  N=1 would waste a full MXU pass + drain,
    # so use a VPU multiply + lane reduction (XLU slot is idle here).
    w3_row = w3_ref[...].astype(jnp.float32)                      # (1, H)
    out = jnp.sum(h2 * w3_row, axis=-1, keepdims=True)            # (TB, 1)

    o_ref[...] = (out + b3_ref[0, 0]).astype(o_ref.dtype)


def value_network_forward(x, params, *, tile_b=512):
    w1, b1, w2, b2, w3, b3 = params
    B, S = x.shape
    H = w1.shape[1]

    # Batch tile: multiple of 8 sublanes, capped at tile_b rows.
    tb = min(tile_b, _round_up(B, 8))
    Bp = _round_up(B, tb)
    if Bp != B:
        x = jnp.pad(x, ((0, Bp - B), (0, 0)))

    flops = 2 * Bp * (S * H + H * H + H)
    bytes_accessed = (Bp * S * 4                       # x (f32)
                      + (S * H + H * H + H) * 2        # bf16 weights
                      + 2 * H * 4 + 4                  # f32 biases
                      + Bp * 4)                        # output

    out = pl.pallas_call(
        value_network_kernel,
        out_shape=jax.ShapeDtypeStruct((Bp, 1), jnp.float32),
        grid=(Bp // tb,),
        in_specs=[
            pl.BlockSpec((tb, S), lambda i: (i, 0)),            # x: streamed over batch
            pl.BlockSpec((S, H), lambda i: (0, 0)),             # w1: VMEM-resident
            pl.BlockSpec((1, H), lambda i: (0, 0)),             # b1
            pl.BlockSpec((H, H), lambda i: (0, 0)),             # w2
            pl.BlockSpec((1, H), lambda i: (0, 0)),             # b2
            pl.BlockSpec((1, H), lambda i: (0, 0)),             # w3 as lane row
            pl.BlockSpec(memory_space=pltpu.MemorySpace.SMEM),  # b3 scalar
        ],
        out_specs=pl.BlockSpec((tb, 1), lambda i: (i, 0)),
        compiler_params=pltpu.CompilerParams(
            dimension_semantics=("parallel",)),
        cost_estimate=pl.CostEstimate(flops=flops, transcendentals=0,
                                      bytes_accessed=bytes_accessed),
    )(x, w1, b1, w2, b2, w3, b3)
    return out[:B]


def init_params(key, state_dim, hidden_dim, init_w=0.003):
    """Deterministic init mirroring the PyTorch module's __init__.

    linear1 / linear2: default torch Linear init U(-1/sqrt(fan_in), 1/sqrt(fan_in)).
    linear3: U(-init_w, init_w) for weight and bias.
    w1/w2 stored as (in, out) bf16; w3 stored as the (1, hidden) row (same as
    torch linear3.weight) in bf16; biases stay f32.
    """
    k1, k2, k3, k4, k5, k6 = jax.random.split(key, 6)
    bound1 = 1.0 / (state_dim ** 0.5)
    bound2 = 1.0 / (hidden_dim ** 0.5)
    w1 = jax.random.uniform(k1, (state_dim, hidden_dim), jnp.float32,
                            -bound1, bound1).astype(jnp.bfloat16)
    b1 = jax.random.uniform(k2, (1, hidden_dim), jnp.float32, -bound1, bound1)
    w2 = jax.random.uniform(k3, (hidden_dim, hidden_dim), jnp.float32,
                            -bound2, bound2).astype(jnp.bfloat16)
    b2 = jax.random.uniform(k4, (1, hidden_dim), jnp.float32, -bound2, bound2)
    w3 = jax.random.uniform(k5, (1, hidden_dim), jnp.float32,
                            -init_w, init_w).astype(jnp.bfloat16)
    b3 = jax.random.uniform(k6, (1, 1), jnp.float32, -init_w, init_w)
    return (w1, b1, w2, b2, w3, b3)


def reference_forward(x, params):
    """Pure-JAX reference with identical dtype handling to the kernel."""
    w1, b1, w2, b2, w3, b3 = params
    xb = x.astype(jnp.bfloat16)
    h1 = jnp.maximum(
        jnp.dot(xb, w1, preferred_element_type=jnp.float32) + b1, 0.0)
    h2 = jnp.maximum(
        jnp.dot(h1.astype(jnp.bfloat16), w2,
                preferred_element_type=jnp.float32) + b2, 0.0)
    out = jnp.sum(h2 * w3.astype(jnp.float32), axis=-1, keepdims=True)
    return out + b3[0, 0]


if __name__ == "__main__":
    batch = 8
    state_dim = 16
    hidden_dim = 32

    key = jax.random.PRNGKey(0)
    k_params, k_x = jax.random.split(key)
    params = init_params(k_params, state_dim, hidden_dim, init_w=0.003)
    x = jax.random.normal(k_x, (batch, state_dim), jnp.float32)

    out = value_network_forward(x, params)
    out = jax.block_until_ready(out)

    ref = reference_forward(x, params)
    assert out.shape == (batch, 1), out.shape
    assert jnp.allclose(out, ref, atol=1e-5, rtol=1e-4), (out, ref)

    print("KERNEL_OK")
</pallas_src>

<mosaic_0001>
module attributes {stable_mosaic.version = 11 : i64} {
  func.func @value_network_kernel(%arg0: i32, %arg1: memref<8x16xf32, #tpu.memory_space<vmem>>, %arg2: memref<16x32xbf16, #tpu.memory_space<vmem>>, %arg3: memref<1x32xf32, #tpu.memory_space<vmem>>, %arg4: memref<32x32xbf16, #tpu.memory_space<vmem>>, %arg5: memref<1x32xf32, #tpu.memory_space<vmem>>, %arg6: memref<1x32xbf16, #tpu.memory_space<vmem>>, %arg7: memref<1x1xf32, #tpu.memory_space<smem>>, %arg8: memref<8x1xf32, #tpu.memory_space<vmem>>) attributes {dimension_semantics = [#tpu.dimension_semantics<parallel>], iteration_bounds = array<i64: 1>, scalar_prefetch = 0 : i64, scratch_operands = 0 : i64, tpu.core_type = #tpu.core_type<tc>, window_params = [{transform_indices = @transform_0, window_bounds = array<i64: 8, 16>}, {pipeline_mode = #tpu.pipeline_mode<synchronous>, transform_indices = @transform_1, window_bounds = array<i64: 16, 32>}, {pipeline_mode = #tpu.pipeline_mode<synchronous>, transform_indices = @transform_2, window_bounds = array<i64: 1, 32>}, {pipeline_mode = #tpu.pipeline_mode<synchronous>, transform_indices = @transform_3, window_bounds = array<i64: 32, 32>}, {pipeline_mode = #tpu.pipeline_mode<synchronous>, transform_indices = @transform_4, window_bounds = array<i64: 1, 32>}, {pipeline_mode = #tpu.pipeline_mode<synchronous>, transform_indices = @transform_5, window_bounds = array<i64: 1, 32>}, {transform_indices = @transform_6, window_bounds = array<i64: 1, 1>}, {transform_indices = @transform_7, window_bounds = array<i64: 8, 1>}]} {
    %c0 = arith.constant 0 : index
    %c0_0 = arith.constant 0 : index
    %0 = vector.load %arg1[%c0, %c0_0] : memref<8x16xf32, #tpu.memory_space<vmem>>, vector<8x16xf32>
    %1 = arith.truncf %0 : vector<8x16xf32> to vector<8x16xbf16>
    %c0_1 = arith.constant 0 : index
    %c0_2 = arith.constant 0 : index
    %2 = vector.load %arg2[%c0_1, %c0_2] : memref<16x32xbf16, #tpu.memory_space<vmem>>, vector<16x32xbf16>
    %cst = arith.constant dense<0.000000e+00> : vector<8x32xf32>
    %3 = tpu.matmul %1, %2, %cst {dimension_numbers = #tpu.dot_dimension_numbers<[1], [0], [0], [1], [0, 0, 1, 1], [], []>} : vector<8x16xbf16>, vector<16x32xbf16>, vector<8x32xf32> -> vector<8x32xf32>
    %c0_3 = arith.constant 0 : index
    %c0_4 = arith.constant 0 : index
    %4 = vector.load %arg3[%c0_3, %c0_4] : memref<1x32xf32, #tpu.memory_space<vmem>>, vector<1x32xf32>
    %5 = vector.broadcast %4 : vector<1x32xf32> to vector<8x32xf32>
    %6 = arith.addf %3, %5 : vector<8x32xf32>
    %cst_5 = arith.constant 0.000000e+00 : f32
    %7 = vector.broadcast %cst_5 : f32 to vector<8x32xf32>
    %8 = arith.maximumf %6, %7 : vector<8x32xf32>
    %9 = arith.truncf %8 : vector<8x32xf32> to vector<8x32xbf16>
    %c0_6 = arith.constant 0 : index
    %c0_7 = arith.constant 0 : index
    %10 = vector.load %arg4[%c0_6, %c0_7] : memref<32x32xbf16, #tpu.memory_space<vmem>>, vector<32x32xbf16>
    %cst_8 = arith.constant dense<0.000000e+00> : vector<8x32xf32>
    %11 = tpu.matmul %9, %10, %cst_8 {dimension_numbers = #tpu.dot_dimension_numbers<[1], [0], [0], [1], [0, 0, 1, 1], [], []>} : vector<8x32xbf16>, vector<32x32xbf16>, vector<8x32xf32> -> vector<8x32xf32>
    %c0_9 = arith.constant 0 : index
    %c0_10 = arith.constant 0 : index
    %12 = vector.load %arg5[%c0_9, %c0_10] : memref<1x32xf32, #tpu.memory_space<vmem>>, vector<1x32xf32>
    %13 = vector.broadcast %12 : vector<1x32xf32> to vector<8x32xf32>
    %14 = arith.addf %11, %13 : vector<8x32xf32>
    %cst_11 = arith.constant 0.000000e+00 : f32
    %15 = vector.broadcast %cst_11 : f32 to vector<8x32xf32>
    %16 = arith.maximumf %14, %15 : vector<8x32xf32>
    %c0_12 = arith.constant 0 : index
    %c0_13 = arith.constant 0 : index
    %17 = vector.load %arg6[%c0_12, %c0_13] : memref<1x32xbf16, #tpu.memory_space<vmem>>, vector<1x32xbf16>
    %18 = arith.extf %17 : vector<1x32xbf16> to vector<1x32xf32>
    %19 = vector.broadcast %18 : vector<1x32xf32> to vector<8x32xf32>
    %20 = arith.mulf %16, %19 : vector<8x32xf32>
    %cst_14 = arith.constant dense<0.000000e+00> : vector<8xf32>
    %21 = vector.multi_reduction <add>, %20, %cst_14 [1] : vector<8x32xf32> to vector<8xf32>
    %22 = vector.shape_cast %21 : vector<8xf32> to vector<8x1xf32>
    %c0_15 = arith.constant 0 : index
    %c0_16 = arith.constant 0 : index
    %23 = memref.load %arg7[%c0_15, %c0_16] : memref<1x1xf32, #tpu.memory_space<smem>>
    %24 = vector.broadcast %23 : f32 to vector<8x1xf32>
    %25 = arith.addf %22, %24 : vector<8x1xf32>
    %c0_17 = arith.constant 0 : index
    %c0_18 = arith.constant 0 : index
    %26 = vector.load %arg8[%c0_17, %c0_18] : memref<8x1xf32, #tpu.memory_space<vmem>>, vector<8x1xf32>
    tpu.vector_store %arg8[%c0_17, %c0_18], %25 {strides = array<i32>} : memref<8x1xf32, #tpu.memory_space<vmem>>, vector<8x1xf32>,
    return
  }
  func.func @transform_0(%arg0: i32) -> (i32, i32) {
    %c0_i32 = arith.constant 0 : i32
    %c0_i32_0 = arith.constant 0 : i32
    return %arg0, %c0_i32 : i32, i32
  }
  func.func @transform_1(%arg0: i32) -> (i32, i32) {
    %c0_i32 = arith.constant 0 : i32
    %c0_i32_0 = arith.constant 0 : i32
    %c0_i32_1 = arith.constant 0 : i32
    return %c0_i32, %c0_i32_0 : i32, i32
  }
  func.func @transform_2(%arg0: i32) -> (i32, i32) {
    %c0_i32 = arith.constant 0 : i32
    %c0_i32_0 = arith.constant 0 : i32
    %c0_i32_1 = arith.constant 0 : i32
    return %c0_i32, %c0_i32_0 : i32, i32
  }
  func.func @transform_3(%arg0: i32) -> (i32, i32) {
    %c0_i32 = arith.constant 0 : i32
    %c0_i32_0 = arith.constant 0 : i32
    %c0_i32_1 = arith.constant 0 : i32
    return %c0_i32, %c0_i32_0 : i32, i32
  }
  func.func @transform_4(%arg0: i32) -> (i32, i32) {
    %c0_i32 = arith.constant 0 : i32
    %c0_i32_0 = arith.constant 0 : i32
    %c0_i32_1 = arith.constant 0 : i32
    return %c0_i32, %c0_i32_0 : i32, i32
  }
  func.func @transform_5(%arg0: i32) -> (i32, i32) {
    %c0_i32 = arith.constant 0 : i32
    %c0_i32_0 = arith.constant 0 : i32
    %c0_i32_1 = arith.constant 0 : i32
    return %c0_i32, %c0_i32_0 : i32, i32
  }
  func.func @transform_6(%arg0: i32) -> (i32, i32) {
    %c0_i32 = arith.constant 0 : i32
    %c0_i32_0 = arith.constant 0 : i32
    %c0_i32_1 = arith.constant 0 : i32
    return %c0_i32, %c0_i32_0 : i32, i32
  }
  func.func @transform_7(%arg0: i32) -> (i32, i32) {
    %c0_i32 = arith.constant 0 : i32
    %c0_i32_0 = arith.constant 0 : i32
    return %arg0, %c0_i32 : i32, i32
  }
}

</mosaic_0001>

<bundles_post_ra>
// kernel: tpu_custom_call.1
= control target key start
LH: loop header
LB: loop body
LE: loop exit
PB: predicated region body
PF: predicated region fallthrough
CT: control target
= control target key end

     0   :  { %13 = vsyncpa [#allocation4], 0  ;;  %s431_s0 = inlined_call_operand.hbm [shape: f32[8,16], index: 0, kind: input, shape index: {}]   ;;  %s432_s1 = inlined_call_operand.hbm [shape: bf16[16,32], index: 1, kind: input, shape index: {}]   ;;  %s433_s2 = inlined_call_operand.vmem [shape: f32[1,32], index: 2, kind: input, shape index: {}]   ;;  %s434_s3 = inlined_call_operand.hbm [shape: bf16[32,32], index: 3, kind: input, shape index: {}]   ;;  %s435_s4 = inlined_call_operand.vmem [shape: f32[1,32], index: 4, kind: input, shape index: {}]   ;;  %s436_s5 = inlined_call_operand.vmem [shape: bf16[1,32], index: 5, kind: input, shape index: {}]   ;;  %s437_s6 = inlined_call_operand.<no memory space> [shape: f32[1,1], index: 6, kind: input, shape index: {}]   ;;  %s438_s7 = inlined_call_operand.vmem [shape: f32[8,1], index: 7, kind: output, shape index: {}]  }
   0x1   :  { %14 = vsyncpa [#allocation6], 0  ;;  %s325_s24 = smov [#allocation5]   ;;  %s255_s28 = scalar_lea.hbm %s432_s1, 128 }
   0x2   :  { %s30_s25 = sshll.u32 %s325_s24, 4  ;;  %p256_p0 = scmp.ne.s32.totalorder %s432_s1, %s255_s28  ;;  %s31_s25 = int_to_ptr.vmem [resolvable:$true] %s30_s25 }
   0x3   :  { %p259_p1 = scmp.lt.u32.totalorder %s255_s28, %s432_s1 }
   0x5   :  { %p261_p2 = pnand %p259_p1, %p256_p0 }
   0x7   :  { %264 = shalt.err (!%p261_p2)
}
   0x8   :  { %s265_s10 = scalar_lea.vmem %s31_s25, 128  ;;  %p270_p4 = scmp.lt.s32.totalorder %s31_s25, %s31_s25 }
   0x9   :  { %p266_p3 = scmp.ne.s32.totalorder %s31_s25, %s265_s10  ;;  %p271_p5 = scmp.lt.s32.totalorder %s265_s10, %s265_s10 }
   0xb   :  { %p272_p6 = por %p271_p5, %p270_p4 }
   0xd   :  { %p273_p7 = pnand %p272_p6, %p266_p3 }
   0xf   :  { %276 = shalt.err (!%p273_p7)
}
  0x10   :  { %s326_s11 = smov 64   ;;  %s327_s12 = smov 4  }
  0x11   :  { %36 = dma.hbm_to_vmem [thread:$0]  %s432_s1, 128, %s31_s25, [#allocation6], %s326_s11, %s326_s11, %s327_s12  }
  0x12   :  { %s328_s15 = smov [#allocation3]   ;;  %s329_s17 = smov [#allocation7]  }
  0x13   :  { %s21_s16 = sshll.u32 %s328_s15, 4  ;;  %s44_s18 = sshll.u32 %s329_s17, 4  ;;  %s22_s16 = int_to_ptr.vmem [resolvable:$true] %s21_s16  ;;  %s45_s18 = int_to_ptr.vmem [resolvable:$true] %s44_s18 }
  0x14   :  { %s277_s21 = scalar_lea.hbm %s431_s0, 128 }
  0x15   :  { %p278_p8 = scmp.ne.s32.totalorder %s431_s0, %s277_s21  ;;  %p281_p9 = scmp.lt.u32.totalorder %s277_s21, %s431_s0 }
  0x17   :  { %p283_p10 = pnand %p281_p9, %p278_p8 }
  0x19   :  { %286 = shalt.err (!%p283_p10)
}
  0x1a   :  { %s287_s1 = scalar_lea.vmem %s22_s16, 128  ;;  %p292_p12 = scmp.lt.s32.totalorder %s22_s16, %s22_s16 }
  0x1b   :  { %p288_p11 = scmp.ne.s32.totalorder %s22_s16, %s287_s1  ;;  %p293_p13 = scmp.lt.s32.totalorder %s287_s1, %s287_s1 }
  0x1d   :  { %p294_p0 = por %p293_p13, %p292_p12 }
  0x1f   :  { %p295_p1 = pnand %p294_p0, %p288_p11 }
  0x21   :  { %298 = shalt.err (!%p295_p1)
}
  0x22   :  { %24 = dma.hbm_to_vmem [thread:$0]  %s431_s0, 128, %s22_s16, [#allocation4]  }
  0x23   :  { %s299_s30 = scalar_lea.hbm %s434_s3, 256 }
  0x24   :  { %p300_p2 = scmp.ne.s32.totalorder %s434_s3, %s299_s30  ;;  %p303_p3 = scmp.lt.u32.totalorder %s299_s30, %s434_s3 }
  0x26   :  { %p305_p4 = pnand %p303_p3, %p300_p2 }
  0x28   :  { %308 = shalt.err (!%p305_p4)
}
  0x29   :  { %s309_s14 = scalar_lea.vmem %s45_s18, 256  ;;  %p314_p6 = scmp.lt.s32.totalorder %s45_s18, %s45_s18 }
  0x2a   :  { %p310_p5 = scmp.ne.s32.totalorder %s45_s18, %s309_s14  ;;  %p315_p7 = scmp.lt.s32.totalorder %s309_s14, %s309_s14 }
  0x2c   :  { %p316_p8 = por %p315_p7, %p314_p6 }
  0x2e   :  { %p317_p9 = pnand %p316_p8, %p310_p5 }
  0x30   :  { %320 = shalt.err (!%p317_p9)
}
  0x31   :  { %50 = dma.hbm_to_vmem [thread:$0]  %s434_s3, 256, %s45_s18, [#allocation6], %s326_s11, %s326_s11, %s327_s12  }
  0x32   :  { %321 = dma.done.wait [#allocation4], 128  }
  0x33   :  { %322 = vsyncadd [#allocation4], 4294967168 }
  0x34   :  { %323 = dma.done.wait [#allocation6], 384  }
  0x35   :  { %324 = vsyncadd [#allocation6], 4294966912  ;;  %v330_v0 = vmov 0.0   ;;  %vm331_vm0 = vmmov 0   ;;  %v252_v1 = vld [vmem:[#allocation5] sm:$0xff]   ;;  %v67_v2 = vld [vmem:[#allocation3] sm:$0xff]  ;;  %v200_v14 = vlaneseq  ;;  %v209_v29 = vstv %s437_s6 }
  0x36   :  { %231 = vmatprep.subr.bf16.mxu0 %v330_v0  ;;  %233 = vmatprep.mubr.msk.bf16.mxu0 %vm331_vm0, %v330_v0  ;;  %vm84_vm1 = vcmask 130048   ;;  %v68_v3 = vpack.c.bf16 %v67_v2, %v67_v2  ;;  %v253_v4 = vld [vmem:[#allocation7] sm:$0xff]   ;;  %v254_v5 = vld [vmem:[#allocation7 + $0x8] sm:$0xff]   ;;  %v219_v6 = vld [vmem:[%s433_s2] ss:$0 sm:$0xff]  ;;  %vm153_vm2 = vcmask 261120  }
  0x37   :  { %237 = vmatprep.subr.bf16.mxu1 %v330_v0  ;;  %241 = vmatprep.mubr.msk.bf16.mxu1 %vm331_vm0, %v330_v0  ;;  %v201_v15 = vshrl.u32 %v200_v14, 7  ;;  %v198_v16 = vld [vmem:[%s436_s5] sm:$0x1]  ;;  %vm211_vm3 = vcmask 7168  }
  0x38   :  { %232 = vmatpush3.bf16.msra.mxu0 %v252_v1  ;;  %238 = vmatpush3.bf16.msra.mxu1 %v253_v4  ;;  %v199_v17 = vunpack.c.l.bf16 %v198_v16  ;;  %v222_v19 = vld [vmem:[%s435_s4] ss:$0 sm:$0xff] }
  0x39   :  { %239 = vmatprep.subr.bf16.mxu1 %v330_v0  ;;  %v202_v18 = vsub.s32 0, %v201_v15 }
  0x3b   :  { %234 = vmatmul.mubr.msk.bf16.vlgmr.msra.gmra.mrb[0].mxu0 %vm84_vm1, %v68_v3  ;;  %v203_v23 = vrot.slane %v199_v17, %v202_v18 }
  0x3c   :  { %240 = vmatpush3.bf16.msra.mxu1 %v254_v5 }
 0x10e   :  { %v122_v7 = vpop.f32.mrb[0].mxu0 }
 0x10f   :  { %v123_v8 = vadd.f32 %v219_v6, %v122_v7  ;;  %v235_v9 = vpop.f32.mrb[1].mxu0 }
 0x110   :  { %v125_v10 = vpop.f32.mrb[2].mxu0 }
 0x111   :  { %v128_v11 = vmax.f32 %v123_v8, 0.0  ;;  %v236_v12 = vpop.f32.mrb[3].mxu0 }
 0x113   :  { %v129_v13 = vpack.c.bf16 %v128_v11, %v128_v11 }
 0x115   :  { %242 = vmatmul.mubr.msk.bf16.vlgmr.msra.gmra.mrb[0].mxu1 %vm153_vm2, %v129_v13 }
 0x1e8   :  { %v191_v20 = vpop.f32.mrb[0].mxu1 }
 0x1e9   :  { %v192_v21 = vadd.f32 %v222_v19, %v191_v20  ;;  %v243_v22 = vpop.f32.mrb[1].mxu1 }
 0x1ea   :  { %v194_v24 = vpop.f32.mrb[2].mxu1 }
 0x1eb   :  { %v197_v25 = vmax.f32 %v192_v21, 0.0  ;;  %v244_v26 = vpop.f32.mrb[3].mxu1 }
 0x1ed   :  { %v204_v27 = vmul.f32 %v203_v23, %v197_v25 }
 0x1ef   :  { %v205_v28 = vsel %vm153_vm2, %v204_v27, 0.0 }
 0x1f0   :  { %206 = vadd.xlane.f32.xlu0 %v205_v28 }
 0x27d   :  { %v207_v30 = vpop.xlane.xlu0 %206 }
 0x27e   :  { %v210_v31 = vadd.f32 %v209_v29, %v207_v30 }
 0x280   :  { %212 = vst.msk [vmem:[%s438_s7] sm:$0xff] %vm211_vm3, %v210_v31 }
 0x281   :  { %217 = vsyncpa [#allocation4], 1 }
 0x282   :  { %218 = vsyncpa [#allocation6], 1 }

</bundles_post_ra>
